<compile_context>
chip_gen: v7x
topology: tpu7x:2x2x1
jax: 0.10.0
libtpu: 0.0.40
codegen_flags: <defaults>
</compile_context>

<pallas_src>
import functools

import jax
import jax.numpy as jnp
from jax.experimental import pallas as pl
from jax.experimental.pallas import tpu as pltpu

HIDDEN = 128
LN_EPS = 1e-5


# ----------------------------- kernel ---------------------------------------


def _layer_norm(h, gamma, beta):
    """LayerNorm over the last (128) axis, all in float32."""
    mu = jnp.mean(h, axis=-1, keepdims=True)
    xc = h - mu
    var = jnp.mean(xc * xc, axis=-1, keepdims=True)
    return xc * jax.lax.rsqrt(var + LN_EPS) * gamma + beta


def _critic_kernel(x_ref,      # (TB, obs_dim) f32  -- cast to bf16 in-kernel
                   w1_ref,     # (obs_dim, 128) bf16
                   w2_ref,     # (128, 128)     bf16
                   p_ref,      # (8, 128) f32 packed: b1,g1,be1,b2,g2,be2,w3,[b3,0...]
                   out_ref,    # (TB, 1) f32
                   *, bf16_tanh):
    p = p_ref[...]
    b1, g1, be1 = p[0:1], p[1:2], p[2:3]
    b2, g2, be2 = p[3:4], p[4:5], p[5:6]
    w3_row = p[6:7]
    b3 = p[7:8, 0:1]

    # ---- Linear(obs_dim -> 128): cast x to bf16 here (free VPU cast), f32 acc ----
    x_bf = x_ref[...].astype(jnp.bfloat16)
    h = jnp.dot(x_bf, w1_ref[...], preferred_element_type=jnp.float32) + b1

    # ---- LayerNorm (f32) + Tanh ----
    h = _layer_norm(h, g1, be1)
    if bf16_tanh:
        # bf16 EUP tanh (v6e/v7x); output feeds the bf16 MXU anyway.
        h = jnp.tanh(h.astype(jnp.bfloat16))
    else:
        h = jnp.tanh(h).astype(jnp.bfloat16)

    # ---- Linear(128 -> 128): bf16 MXU inputs, f32 accumulation ----
    h = jnp.dot(h, w2_ref[...], preferred_element_type=jnp.float32) + b2

    # ---- LayerNorm + Tanh (f32, feeds the f32 value head) ----
    h = jnp.tanh(_layer_norm(h, g2, be2))

    # ---- value head Linear(128 -> 1): VPU multiply + lane reduce (off the MXU) ----
    v = jnp.sum(h * w3_row, axis=-1, keepdims=True) + b3
    out_ref[...] = v.astype(out_ref.dtype)


# ----------------------------- wrapper ---------------------------------------


def _round_up(n, m):
    return ((n + m - 1) // m) * m


def _vmem_capacity_bytes():
    try:
        return int(pltpu.get_tpu_info().vmem_capacity_bytes)
    except Exception:
        return 64 * 1024 * 1024  # conservative (v7x per-TC physical VMEM)


def _supports_bf16_eup():
    try:
        kind = jax.devices()[0].device_kind.lower()
    except Exception:
        return False
    return ("v6" in kind) or ("v7" in kind)


def _per_row_vmem_bytes(obs_dim):
    # double-buffered f32 x tile + 3 live f32 (tb,128) intermediates
    # + double-buffered (tb,1) out tile (lane-padded to 128 in VMEM).
    return 2 * obs_dim * 4 + 3 * HIDDEN * 4 + 2 * HIDDEN * 4


def _pick_tile_rows(batch16, obs_dim, vmem_cap):
    budget = min(vmem_cap // 4, 16 * 1024 * 1024)  # <= ~16 MiB of tiles+intermediates
    tb = (budget // _per_row_vmem_bytes(obs_dim)) // 256 * 256
    tb = max(256, tb)
    return min(tb, batch16)


def critic_forward(x, params):
    """x: [batch, obs_dim] float32. Returns (values [batch] float32, hidden=None)."""
    x = jnp.asarray(x, jnp.float32)
    batch, obs_dim = x.shape
    (w1, b1, g1, be1, w2, b2, g2, be2, w3, b3) = params

    vmem_cap = _vmem_capacity_bytes()
    bf16_tanh = _supports_bf16_eup()

    # ---- batch tiling from a VMEM budget; keep grid even (>1) for v7x megacore ----
    batch16 = _round_up(batch, 16)
    tb = _pick_tile_rows(batch16, obs_dim, vmem_cap)
    nb = -(-batch16 // tb)
    if nb > 1 and nb % 2 == 1:
        nb += 1
        tb = _round_up(-(-batch16 // nb), 16)
        nb = -(-batch16 // tb)
    padded = nb * tb

    # Zero-pad only when the batch isn't tile-aligned (keeps LN/tanh finite on the
    # tail rows; padded rows are sliced off below).
    x_p = x if padded == batch else jnp.pad(x, ((0, padded - batch), (0, 0)))

    # ---- weights: tiny one-time bf16 casts; all (1,128) vectors + b3 packed ----
    w1_bf = jnp.asarray(w1, jnp.float32).astype(jnp.bfloat16)
    w2_bf = jnp.asarray(w2, jnp.float32).astype(jnp.bfloat16)
    b3_row = jnp.zeros((1, HIDDEN), jnp.float32).at[0, 0].set(
        jnp.asarray(b3, jnp.float32).reshape(()))
    packed = jnp.concatenate(
        [jnp.asarray(a, jnp.float32).reshape(1, HIDDEN)
         for a in (b1, g1, be1, b2, g2, be2, w3)] + [b3_row],
        axis=0)                                            # (8, 128) f32

    const = lambda shape: pl.BlockSpec(shape, lambda i: (0, 0))

    # ---- scheduler hints ----
    flops = int(2 * padded * (obs_dim * HIDDEN + HIDDEN * HIDDEN + HIDDEN))
    transcendentals = int(padded * (2 * HIDDEN + 2))
    bytes_accessed = int(padded * obs_dim * 4                      # x (f32, read once)
                         + (w1_bf.size + w2_bf.size) * 2           # bf16 weights
                         + packed.size * 4
                         + padded * 4)                             # output

    # ---- VMEM limit: tiles + live intermediates + resident weights, 25% headroom ----
    need = (2 * tb * obs_dim * 4            # x double buffer
            + 2 * tb * HIDDEN * 4           # out tile (lane-padded), double buffer
            + 3 * tb * HIDDEN * 4           # live f32 intermediates
            + (obs_dim * HIDDEN + HIDDEN * HIDDEN) * 2 + 8 * HIDDEN * 4)
    vmem_limit = int(min(max(2 * need, 8 * 1024 * 1024), int(vmem_cap * 0.75)))

    values_2d = pl.pallas_call(
        functools.partial(_critic_kernel, bf16_tanh=bf16_tanh),
        out_shape=jax.ShapeDtypeStruct((padded, 1), jnp.float32),
        grid=(nb,),
        in_specs=[
            pl.BlockSpec((tb, obs_dim), lambda i: (i, 0)),   # x tile (f32)
            const((obs_dim, HIDDEN)),                        # w1 (bf16, VMEM-resident)
            const((HIDDEN, HIDDEN)),                         # w2 (bf16, VMEM-resident)
            const((8, HIDDEN)),                              # packed vectors + b3
        ],
        out_specs=pl.BlockSpec((tb, 1), lambda i: (i, 0)),
        compiler_params=pltpu.CompilerParams(
            dimension_semantics=("parallel",),
            vmem_limit_bytes=vmem_limit,
        ),
        cost_estimate=pl.CostEstimate(
            flops=flops,
            transcendentals=transcendentals,
            bytes_accessed=bytes_accessed,
        ),
    )(x_p, w1_bf, w2_bf, packed)

    # TODO(synk): GRU path (use_rnn=True) not implemented; module defaults to use_rnn=False.
    return values_2d[:batch, 0], None


# ----------------------------- reference / test -------------------------------


def init_params(key, obs_dim):
    """Deterministic synthetic parameters matching the PyTorch module's shapes."""
    ks = jax.random.split(key, 6)

    def uniform_fan_in(k, shape, fan_in):
        bound = 1.0 / jnp.sqrt(fan_in)
        return jax.random.uniform(k, shape, jnp.float32, -bound, bound)

    w1 = uniform_fan_in(ks[0], (obs_dim, HIDDEN), obs_dim)
    b1 = uniform_fan_in(ks[1], (1, HIDDEN), obs_dim)
    g1 = jnp.ones((1, HIDDEN), jnp.float32)
    be1 = jnp.zeros((1, HIDDEN), jnp.float32)

    w2 = uniform_fan_in(ks[2], (HIDDEN, HIDDEN), HIDDEN)
    b2 = uniform_fan_in(ks[3], (1, HIDDEN), HIDDEN)
    g2 = jnp.ones((1, HIDDEN), jnp.float32)
    be2 = jnp.zeros((1, HIDDEN), jnp.float32)

    w3 = uniform_fan_in(ks[4], (HIDDEN, 1), HIDDEN)
    b3 = uniform_fan_in(ks[5], (1,), HIDDEN)

    return (w1, b1, g1, be1, w2, b2, g2, be2, w3, b3)


def critic_ref(x, params, *, bf16_matmul=True, bf16_tanh=False):
    """Pure-JAX reference. Flags mirror the kernel's MXU / EUP dtypes."""
    (w1, b1, g1, be1, w2, b2, g2, be2, w3, b3) = params
    cast = (lambda a: a.astype(jnp.bfloat16)) if bf16_matmul else (lambda a: a)

    def ln(h, g, b):
        mu = jnp.mean(h, axis=-1, keepdims=True)
        var = jnp.mean((h - mu) ** 2, axis=-1, keepdims=True)
        return (h - mu) * jax.lax.rsqrt(var + LN_EPS) * g.reshape(1, -1) + b.reshape(1, -1)

    h = jnp.dot(cast(x), cast(w1), preferred_element_type=jnp.float32) + b1.reshape(1, -1)
    h = ln(h, g1, be1)
    h = jnp.tanh(h.astype(jnp.bfloat16)) if (bf16_matmul and bf16_tanh) else jnp.tanh(h)
    h = jnp.dot(cast(h), cast(w2), preferred_element_type=jnp.float32) + b2.reshape(1, -1)
    h = jnp.tanh(ln(h, g2, be2))
    return (jnp.dot(h.astype(jnp.float32), w3.reshape(HIDDEN, 1))
            + jnp.reshape(jnp.asarray(b3, jnp.float32), (1, 1)))[:, 0]


if __name__ == "__main__":
    key = jax.random.PRNGKey(0)
    k_param, k_x = jax.random.split(key)

    batch, obs_dim = 8, 32
    params = init_params(k_param, obs_dim)
    x = jax.random.normal(k_x, (batch, obs_dim), jnp.float32)

    values, hidden = critic_forward(x, params)
    values = jax.block_until_ready(values)

    bf16_tanh = _supports_bf16_eup()
    ref_mirror = critic_ref(x, params, bf16_matmul=True, bf16_tanh=bf16_tanh)
    ref_f32 = critic_ref(x, params, bf16_matmul=False)

    assert values.shape == (batch,)
    assert hidden is None
    # tight check vs. a reference that mirrors the kernel's numerics
    assert jnp.allclose(values, ref_mirror, atol=2e-3, rtol=2e-3), (values, ref_mirror)
    # loose check vs. full-f32 semantics (documented bf16-MXU precision divergence)
    assert jnp.allclose(values, ref_f32, atol=1e-1, rtol=1e-1), (values, ref_f32)

    print("KERNEL_OK")
</pallas_src>

<mosaic_0001>
module attributes {stable_mosaic.version = 11 : i64} {
  func.func @_critic_kernel(%arg0: i32, %arg1: memref<16x32xf32, #tpu.memory_space<vmem>>, %arg2: memref<32x128xbf16, #tpu.memory_space<vmem>>, %arg3: memref<128x128xbf16, #tpu.memory_space<vmem>>, %arg4: memref<8x128xf32, #tpu.memory_space<vmem>>, %arg5: memref<16x1xf32, #tpu.memory_space<vmem>>) attributes {dimension_semantics = [#tpu.dimension_semantics<parallel>], iteration_bounds = array<i64: 1>, scalar_prefetch = 0 : i64, scratch_operands = 0 : i64, tpu.core_type = #tpu.core_type<tc>, window_params = [{transform_indices = @transform_0, window_bounds = array<i64: 16, 32>}, {pipeline_mode = #tpu.pipeline_mode<synchronous>, transform_indices = @transform_1, window_bounds = array<i64: 32, 128>}, {pipeline_mode = #tpu.pipeline_mode<synchronous>, transform_indices = @transform_2, window_bounds = array<i64: 128, 128>}, {pipeline_mode = #tpu.pipeline_mode<synchronous>, transform_indices = @transform_3, window_bounds = array<i64: 8, 128>}, {transform_indices = @transform_4, window_bounds = array<i64: 16, 1>}]} {
    %c0 = arith.constant 0 : index
    %c0_0 = arith.constant 0 : index
    %0 = vector.load %arg4[%c0, %c0_0] : memref<8x128xf32, #tpu.memory_space<vmem>>, vector<8x128xf32>
    %1 = vector.extract_strided_slice %0 {offsets = [0, 0], sizes = [1, 128], strides = [1, 1]} : vector<8x128xf32> to vector<1x128xf32>
    %2 = vector.extract_strided_slice %0 {offsets = [1, 0], sizes = [1, 128], strides = [1, 1]} : vector<8x128xf32> to vector<1x128xf32>
    %3 = vector.extract_strided_slice %0 {offsets = [2, 0], sizes = [1, 128], strides = [1, 1]} : vector<8x128xf32> to vector<1x128xf32>
    %4 = vector.extract_strided_slice %0 {offsets = [3, 0], sizes = [1, 128], strides = [1, 1]} : vector<8x128xf32> to vector<1x128xf32>
    %5 = vector.extract_strided_slice %0 {offsets = [4, 0], sizes = [1, 128], strides = [1, 1]} : vector<8x128xf32> to vector<1x128xf32>
    %6 = vector.extract_strided_slice %0 {offsets = [5, 0], sizes = [1, 128], strides = [1, 1]} : vector<8x128xf32> to vector<1x128xf32>
    %7 = vector.extract_strided_slice %0 {offsets = [6, 0], sizes = [1, 128], strides = [1, 1]} : vector<8x128xf32> to vector<1x128xf32>
    %8 = vector.extract_strided_slice %0 {offsets = [7, 0], sizes = [1, 1], strides = [1, 1]} : vector<8x128xf32> to vector<1x1xf32>
    %c0_1 = arith.constant 0 : index
    %c0_2 = arith.constant 0 : index
    %9 = vector.load %arg1[%c0_1, %c0_2] : memref<16x32xf32, #tpu.memory_space<vmem>>, vector<16x32xf32>
    %10 = arith.truncf %9 : vector<16x32xf32> to vector<16x32xbf16>
    %c0_3 = arith.constant 0 : index
    %c0_4 = arith.constant 0 : index
    %11 = vector.load %arg2[%c0_3, %c0_4] : memref<32x128xbf16, #tpu.memory_space<vmem>>, vector<32x128xbf16>
    %cst = arith.constant dense<0.000000e+00> : vector<16x128xf32>
    %12 = tpu.matmul %10, %11, %cst {dimension_numbers = #tpu.dot_dimension_numbers<[1], [0], [0], [1], [0, 0, 1, 1], [], []>} : vector<16x32xbf16>, vector<32x128xbf16>, vector<16x128xf32> -> vector<16x128xf32>
    %13 = vector.broadcast %1 : vector<1x128xf32> to vector<16x128xf32>
    %14 = arith.addf %12, %13 : vector<16x128xf32>
    %cst_5 = arith.constant dense<0.000000e+00> : vector<16xf32>
    %15 = vector.multi_reduction <add>, %14, %cst_5 [1] : vector<16x128xf32> to vector<16xf32>
    %16 = vector.shape_cast %15 : vector<16xf32> to vector<16x1xf32>
    %cst_6 = arith.constant 1.280000e+02 : f32
    %17 = vector.broadcast %cst_6 : f32 to vector<16x1xf32>
    %18 = arith.divf %16, %17 : vector<16x1xf32>
    %19 = vector.broadcast %18 : vector<16x1xf32> to vector<16x128xf32>
    %20 = arith.subf %14, %19 : vector<16x128xf32>
    %21 = arith.mulf %20, %20 : vector<16x128xf32>
    %cst_7 = arith.constant dense<0.000000e+00> : vector<16xf32>
    %22 = vector.multi_reduction <add>, %21, %cst_7 [1] : vector<16x128xf32> to vector<16xf32>
    %23 = vector.shape_cast %22 : vector<16xf32> to vector<16x1xf32>
    %cst_8 = arith.constant 1.280000e+02 : f32
    %24 = vector.broadcast %cst_8 : f32 to vector<16x1xf32>
    %25 = arith.divf %23, %24 : vector<16x1xf32>
    %cst_9 = arith.constant 9.99999974E-6 : f32
    %26 = vector.broadcast %cst_9 : f32 to vector<16x1xf32>
    %27 = arith.addf %25, %26 : vector<16x1xf32>
    %28 = math.rsqrt %27 : vector<16x1xf32>
    %29 = vector.broadcast %28 : vector<16x1xf32> to vector<16x128xf32>
    %30 = arith.mulf %20, %29 : vector<16x128xf32>
    %31 = vector.broadcast %2 : vector<1x128xf32> to vector<16x128xf32>
    %32 = arith.mulf %30, %31 : vector<16x128xf32>
    %33 = vector.broadcast %3 : vector<1x128xf32> to vector<16x128xf32>
    %34 = arith.addf %32, %33 : vector<16x128xf32>
    %35 = math.tanh %34 : vector<16x128xf32>
    %36 = arith.truncf %35 : vector<16x128xf32> to vector<16x128xbf16>
    %c0_10 = arith.constant 0 : index
    %c0_11 = arith.constant 0 : index
    %37 = vector.load %arg3[%c0_10, %c0_11] : memref<128x128xbf16, #tpu.memory_space<vmem>>, vector<128x128xbf16>
    %cst_12 = arith.constant dense<0.000000e+00> : vector<16x128xf32>
    %38 = tpu.matmul %36, %37, %cst_12 {dimension_numbers = #tpu.dot_dimension_numbers<[1], [0], [0], [1], [0, 0, 1, 1], [], []>} : vector<16x128xbf16>, vector<128x128xbf16>, vector<16x128xf32> -> vector<16x128xf32>
    %39 = vector.broadcast %4 : vector<1x128xf32> to vector<16x128xf32>
    %40 = arith.addf %38, %39 : vector<16x128xf32>
    %cst_13 = arith.constant dense<0.000000e+00> : vector<16xf32>
    %41 = vector.multi_reduction <add>, %40, %cst_13 [1] : vector<16x128xf32> to vector<16xf32>
    %42 = vector.shape_cast %41 : vector<16xf32> to vector<16x1xf32>
    %cst_14 = arith.constant 1.280000e+02 : f32
    %43 = vector.broadcast %cst_14 : f32 to vector<16x1xf32>
    %44 = arith.divf %42, %43 : vector<16x1xf32>
    %45 = vector.broadcast %44 : vector<16x1xf32> to vector<16x128xf32>
    %46 = arith.subf %40, %45 : vector<16x128xf32>
    %47 = arith.mulf %46, %46 : vector<16x128xf32>
    %cst_15 = arith.constant dense<0.000000e+00> : vector<16xf32>
    %48 = vector.multi_reduction <add>, %47, %cst_15 [1] : vector<16x128xf32> to vector<16xf32>
    %49 = vector.shape_cast %48 : vector<16xf32> to vector<16x1xf32>
    %cst_16 = arith.constant 1.280000e+02 : f32
    %50 = vector.broadcast %cst_16 : f32 to vector<16x1xf32>
    %51 = arith.divf %49, %50 : vector<16x1xf32>
    %cst_17 = arith.constant 9.99999974E-6 : f32
    %52 = vector.broadcast %cst_17 : f32 to vector<16x1xf32>
    %53 = arith.addf %51, %52 : vector<16x1xf32>
    %54 = math.rsqrt %53 : vector<16x1xf32>
    %55 = vector.broadcast %54 : vector<16x1xf32> to vector<16x128xf32>
    %56 = arith.mulf %46, %55 : vector<16x128xf32>
    %57 = vector.broadcast %5 : vector<1x128xf32> to vector<16x128xf32>
    %58 = arith.mulf %56, %57 : vector<16x128xf32>
    %59 = vector.broadcast %6 : vector<1x128xf32> to vector<16x128xf32>
    %60 = arith.addf %58, %59 : vector<16x128xf32>
    %61 = math.tanh %60 : vector<16x128xf32>
    %62 = vector.broadcast %7 : vector<1x128xf32> to vector<16x128xf32>
    %63 = arith.mulf %61, %62 : vector<16x128xf32>
    %cst_18 = arith.constant dense<0.000000e+00> : vector<16xf32>
    %64 = vector.multi_reduction <add>, %63, %cst_18 [1] : vector<16x128xf32> to vector<16xf32>
    %65 = vector.shape_cast %64 : vector<16xf32> to vector<16x1xf32>
    %66 = vector.broadcast %8 : vector<1x1xf32> to vector<16x1xf32>
    %67 = arith.addf %65, %66 : vector<16x1xf32>
    %c0_19 = arith.constant 0 : index
    %c0_20 = arith.constant 0 : index
    %68 = vector.load %arg5[%c0_19, %c0_20] : memref<16x1xf32, #tpu.memory_space<vmem>>, vector<16x1xf32>
    tpu.vector_store %arg5[%c0_19, %c0_20], %67 {strides = array<i32>} : memref<16x1xf32, #tpu.memory_space<vmem>>, vector<16x1xf32>,
    return
  }
  func.func @transform_0(%arg0: i32) -> (i32, i32) {
    %c0_i32 = arith.constant 0 : i32
    %c0_i32_0 = arith.constant 0 : i32
    return %arg0, %c0_i32 : i32, i32
  }
  func.func @transform_1(%arg0: i32) -> (i32, i32) {
    %c0_i32 = arith.constant 0 : i32
    %c0_i32_0 = arith.constant 0 : i32
    %c0_i32_1 = arith.constant 0 : i32
    return %c0_i32, %c0_i32_0 : i32, i32
  }
  func.func @transform_2(%arg0: i32) -> (i32, i32) {
    %c0_i32 = arith.constant 0 : i32
    %c0_i32_0 = arith.constant 0 : i32
    %c0_i32_1 = arith.constant 0 : i32
    return %c0_i32, %c0_i32_0 : i32, i32
  }
  func.func @transform_3(%arg0: i32) -> (i32, i32) {
    %c0_i32 = arith.constant 0 : i32
    %c0_i32_0 = arith.constant 0 : i32
    %c0_i32_1 = arith.constant 0 : i32
    return %c0_i32, %c0_i32_0 : i32, i32
  }
  func.func @transform_4(%arg0: i32) -> (i32, i32) {
    %c0_i32 = arith.constant 0 : i32
    %c0_i32_0 = arith.constant 0 : i32
    return %arg0, %c0_i32 : i32, i32
  }
}

</mosaic_0001>

<bundles_post_ra>
// kernel: tpu_custom_call.1
= control target key start
LH: loop header
LB: loop body
LE: loop exit
PB: predicated region body
PF: predicated region fallthrough
CT: control target
= control target key end

     0   :  { %9 = vsyncpa [#allocation3], 0  ;;  %s597_s0 = inlined_call_operand.hbm [shape: f32[16,32], index: 0, kind: input, shape index: {}]   ;;  %s598_s1 = inlined_call_operand.hbm [shape: bf16[32,128], index: 1, kind: input, shape index: {}]   ;;  %s599_s2 = inlined_call_operand.hbm [shape: bf16[128,128], index: 2, kind: input, shape index: {}]   ;;  %s600_s3 = inlined_call_operand.vmem [shape: f32[8,128], index: 3, kind: input, shape index: {}]   ;;  %s601_s4 = inlined_call_operand.vmem [shape: f32[16,1], index: 4, kind: output, shape index: {}]  }
   0x1   :  { %10 = vsyncpa [#allocation5], 0  ;;  %s492_s15 = smov [#allocation4]   ;;  %s422_s19 = scalar_lea.hbm %s598_s1, 256 }
   0x2   :  { %s28_s16 = sshll.u32 %s492_s15, 4  ;;  %p423_p0 = scmp.ne.s32.totalorder %s598_s1, %s422_s19  ;;  %s29_s16 = int_to_ptr.vmem [resolvable:$true] %s28_s16 }
   0x3   :  { %p426_p1 = scmp.lt.u32.totalorder %s422_s19, %s598_s1 }
   0x5   :  { %p428_p2 = pnand %p426_p1, %p423_p0 }
   0x7   :  { %431 = shalt.err (!%p428_p2)
}
   0x8   :  { %s432_s24 = scalar_lea.vmem %s29_s16, 256  ;;  %p437_p4 = scmp.lt.s32.totalorder %s29_s16, %s29_s16 }
   0x9   :  { %p433_p3 = scmp.ne.s32.totalorder %s29_s16, %s432_s24  ;;  %p438_p5 = scmp.lt.s32.totalorder %s432_s24, %s432_s24 }
   0xb   :  { %p439_p6 = por %p438_p5, %p437_p4 }
   0xd   :  { %p440_p7 = pnand %p439_p6, %p433_p3 }
   0xf   :  { %443 = shalt.err (!%p440_p7)
}
  0x10   :  { %s493_s25 = smov 64   ;;  %s494_s26 = smov 4  }
  0x11   :  { %34 = dma.hbm_to_vmem [thread:$0]  %s598_s1, 256, %s29_s16, [#allocation5], %s493_s25, %s493_s25, %s494_s26  }
  0x12   :  { %s495_s29 = smov [#allocation2]   ;;  %s444_s7 = scalar_lea.hbm %s597_s0, 256 }
  0x13   :  { %s16_s30 = sshll.u32 %s495_s29, 4  ;;  %p445_p8 = scmp.ne.s32.totalorder %s597_s0, %s444_s7  ;;  %s17_s30 = int_to_ptr.vmem [resolvable:$true] %s16_s30 }
  0x14   :  { %p448_p9 = scmp.lt.u32.totalorder %s444_s7, %s597_s0 }
  0x16   :  { %p450_p10 = pnand %p448_p9, %p445_p8 }
  0x18   :  { %453 = shalt.err (!%p450_p10)
}
  0x19   :  { %s454_s12 = scalar_lea.vmem %s17_s30, 256  ;;  %p459_p12 = scmp.lt.s32.totalorder %s17_s30, %s17_s30 }
  0x1a   :  { %p455_p11 = scmp.ne.s32.totalorder %s17_s30, %s454_s12  ;;  %p460_p13 = scmp.lt.s32.totalorder %s454_s12, %s454_s12 }
  0x1c   :  { %p461_p0 = por %p460_p13, %p459_p12 }
  0x1e   :  { %p462_p1 = pnand %p461_p0, %p455_p11 }
  0x20   :  { %465 = shalt.err (!%p462_p1)
}
  0x21   :  { %s496_s1 = smov 128   ;;  %s497_s13 = smov 8  }
  0x22   :  { %22 = dma.hbm_to_vmem [thread:$0]  %s597_s0, 256, %s17_s30, [#allocation3], %s496_s1, %s496_s1, %s497_s13  }
  0x23   :  { %s498_s16 = smov [#allocation6]   ;;  %s466_s20 = scalar_lea.hbm %s599_s2, 1024 }
  0x24   :  { %s40_s17 = sshll.u32 %s498_s16, 4  ;;  %p467_p2 = scmp.ne.s32.totalorder %s599_s2, %s466_s20  ;;  %s41_s17 = int_to_ptr.vmem [resolvable:$true] %s40_s17 }
  0x25   :  { %p470_p3 = scmp.lt.u32.totalorder %s466_s20, %s599_s2 }
  0x27   :  { %p472_p4 = pnand %p470_p3, %p467_p2 }
  0x29   :  { %475 = shalt.err (!%p472_p4)
}
  0x2a   :  { %s476_s27 = scalar_lea.vmem %s41_s17, 1024  ;;  %p481_p6 = scmp.lt.s32.totalorder %s41_s17, %s41_s17 }
  0x2b   :  { %p477_p5 = scmp.ne.s32.totalorder %s41_s17, %s476_s27  ;;  %p482_p7 = scmp.lt.s32.totalorder %s476_s27, %s476_s27 }
  0x2d   :  { %p483_p8 = por %p482_p7, %p481_p6 }
  0x2f   :  { %p484_p9 = pnand %p483_p8, %p477_p5 }
  0x31   :  { %487 = shalt.err (!%p484_p9)
}
  0x32   :  { %46 = dma.hbm_to_vmem [thread:$0]  %s599_s2, 1024, %s41_s17, [#allocation5], %s493_s25, %s493_s25, %s494_s26  }
  0x33   :  { %488 = dma.done.wait [#allocation3], 256  }
  0x34   :  { %489 = vsyncadd [#allocation3], 4294967040 }
  0x35   :  { %490 = dma.done.wait [#allocation5], 1280  }
  0x36   :  { %491 = vsyncadd [#allocation5], 4294966016  ;;  %v499_v0 = vmov 0.0   ;;  %vm500_vm0 = vmmov 0   ;;  %v396_v1 = vld [vmem:[#allocation4] sm:$0xff]   ;;  %v397_v2 = vld [vmem:[#allocation4 + $0x8] sm:$0xff]   ;;  %v67_v6 = vlaneseq }
  0x37   :  { %359 = vmatprep.subr.bf16.mxu0 %v499_v0  ;;  %363 = vmatprep.mubr.msk.bf16.mxu0 %vm500_vm0, %v499_v0  ;;  %v60_v3 = vld [vmem:[#allocation2] sm:$0xff]  ;;  %v61_v4 = vld [vmem:[#allocation2 + $0x8] sm:$0xff]  ;;  %vm83_vm1 = vcmask 261120   ;;  %v574_v9 = vld [vmem:[%s600_s3] sm:$0xff]  ;;  %vm327_vm2 = vcmask 7168  }
  0x38   :  { %367 = vmatprep.subr.bf16.mxu1 %v499_v0  ;;  %383 = vmatprep.mubr.msk.bf16.mxu1 %vm500_vm0, %v499_v0  ;;  %v62_v5 = vpack.c.bf16 %v61_v4, %v60_v3  ;;  %v568_v7 = vshrl.u32 %v67_v6, 7  ;;  %v398_v25 = vld [vmem:[#allocation6] sm:$0xff]   ;;  %v399_v26 = vld [vmem:[#allocation6 + $0x8] sm:$0xff]   ;;  %v400_v27 = vld [vmem:[#allocation6 + $0x10] sm:$0xff]  }
  0x39   :  { %360 = vmatpush3.bf16.msra.mxu0 %v396_v1  ;;  %368 = vmatpush3.bf16.msra.mxu1 %v398_v25  ;;  %v401_v28 = vld [vmem:[#allocation6 + $0x18] sm:$0xff]   ;;  %v402_v29 = vld [vmem:[#allocation6 + $0x20] sm:$0xff]   ;;  %v403_v30 = vld [vmem:[#allocation6 + $0x28] sm:$0xff]  }
  0x3a   :  { %361 = vmatprep.subr.bf16.mxu0 %v499_v0  ;;  %v69_v8 = vsub.s32 0, %v568_v7  ;;  %369 = vmatprep.subr.bf16.mxu1 %v499_v0  ;;  %v404_v31 = vld [vmem:[#allocation6 + $0x30] sm:$0xff]   ;;  %v405_v32 = vld [vmem:[#allocation6 + $0x38] sm:$0xff]   ;;  %v153_v39 = vsub.s32 1, %v568_v7  ;;  %v159_v40 = vsub.s32 2, %v568_v7  ;;  %v184_v54 = vsub.s32 3, %v568_v7 }
  0x3c   :  { %v70_v10 = vrot.slane %v574_v9, %v69_v8  ;;  %v154_v41 = vrot.slane %v574_v9, %v153_v39  ;;  %v160_v44 = vrot.slane %v574_v9, %v159_v40  ;;  %v185_v55 = vrot.slane %v574_v9, %v184_v54 }
  0x3d   :  { %362 = vmatpush3.bf16.msra.mxu0 %v397_v2  ;;  %370 = vmatpush3.bf16.msra.mxu1 %v399_v26  ;;  %v313_v26 = vsub.s32 6, %v568_v7 }
  0x3e   :  { %371 = vmatprep.subr.bf16.mxu1 %v499_v0 }
  0x40   :  { %364 = vmatmul.mubr.msk.bf16.vlgmr.msra.gmra.mrb[0].mxu0 %vm83_vm1, %v62_v5 }
  0x41   :  { %372 = vmatpush3.bf16.msra.mxu1 %v400_v27  ;;  %v314_v27 = vrot.slane %v574_v9, %v313_v26 }
  0x42   :  { %373 = vmatprep.subr.bf16.mxu1 %v499_v0 }
  0x45   :  { %374 = vmatpush3.bf16.msra.mxu1 %v401_v28 }
  0x46   :  { %375 = vmatprep.subr.bf16.mxu1 %v499_v0 }
  0x49   :  { %376 = vmatpush3.bf16.msra.mxu1 %v402_v29 }
  0x4a   :  { %377 = vmatprep.subr.bf16.mxu1 %v499_v0 }
  0x4d   :  { %378 = vmatpush3.bf16.msra.mxu1 %v403_v30 }
  0x4e   :  { %379 = vmatprep.subr.bf16.mxu1 %v499_v0 }
  0x51   :  { %380 = vmatpush3.bf16.msra.mxu1 %v404_v31 }
  0x52   :  { %381 = vmatprep.subr.bf16.mxu1 %v499_v0 }
  0x55   :  { %382 = vmatpush3.bf16.msra.mxu1 %v405_v32  ;;  %v323_v32 = vsub.s32 7, %v568_v7 }
 0x113   :  { %v121_v11 = vpop.f32.mrb[0].mxu0 }
 0x114   :  { %v122_v12 = vadd.f32 %v121_v11, %v70_v10  ;;  %v365_v13 = vpop.f32.mrb[1].mxu0 }
 0x115   :  { %v124_v14 = vpop.f32.mrb[2].mxu0 }
 0x116   :  { %v366_v15 = vpop.f32.mrb[3].mxu0  ;;  %128 = vadd.xlane.f32.xlu0 %v122_v12  ;;  %v125_v16 = vadd.f32 %v124_v14, %v70_v10  ;;  %v299_v14 = vsub.s32 4, %v568_v7 }
 0x117   :  { %v305_v15 = vsub.s32 5, %v568_v7 }
 0x11a   :  { %130 = vadd.xlane.f32.xlu0 %v125_v16 }
 0x1a3   :  { %v129_v17 = vpop.xlane.xlu0 %128 }
 0x1a4   :  { %v133_v18 = vmul.f32 0.0078125, %v129_v17 }
 0x1a6   :  { %v135_v19 = vsub.f32 %v122_v12, %v133_v18 }
 0x1a7   :  { %v131_v20 = vpop.xlane.xlu0 %130 }
 0x1a8   :  { %v134_v21 = vmul.f32 0.0078125, %v131_v20  ;;  %v137_v22 = vmul.f32 %v135_v19, %v135_v19 }
 0x1aa   :  { %v136_v23 = vsub.f32 %v125_v16, %v134_v21  ;;  %139 = vadd.xlane.f32.xlu1 %v137_v22  ;;  %v300_v16 = vrot.slane %v574_v9, %v299_v14 }
 0x1ac   :  { %v138_v24 = vmul.f32 %v136_v23, %v136_v23 }
 0x1ae   :  { %141 = vadd.xlane.f32.xlu1 %v138_v24 }
 0x237   :  { %v140_v33 = vpop.xlane.xlu1 %139 }
 0x238   :  { %v143_v34 = vmul.f32 0.0078125, %v140_v33  ;;  %v324_v33 = vrot.slane %v574_v9, %v323_v32 }
 0x23a   :  { %v145_v35 = vadd.f32 1e-05, %v143_v34 }
 0x23b   :  { %v142_v36 = vpop.xlane.xlu1 %141 }
 0x23c   :  { %406 = vrsqrt.f32 %v145_v35  ;;  %v144_v37 = vmul.f32 0.0078125, %v142_v36 }
 0x23e   :  { %v146_v38 = vadd.f32 1e-05, %v144_v37 }
 0x240   :  { %408 = vrsqrt.f32 %v146_v38 }
 0x246   :  { %v407_v42 = vpop.eup %406 }
 0x247   :  { %v149_v43 = vmul.f32 %v407_v42, %v135_v19  ;;  %v306_v19 = vrot.slane %v574_v9, %v305_v15 }
 0x249   :  { %v155_v45 = vmul.f32 %v154_v41, %v149_v43 }
 0x24a   :  { %v409_v46 = vpop.eup %408 }
 0x24b   :  { %v150_v47 = vmul.f32 %v409_v46, %v136_v23  ;;  %v161_v48 = vadd.f32 %v160_v44, %v155_v45 }
 0x24d   :  { %v156_v49 = vmul.f32 %v154_v41, %v150_v47  ;;  %410 = vtanh.f32 %v161_v48 }
 0x24f   :  { %v162_v50 = vadd.f32 %v160_v44, %v156_v49 }
 0x251   :  { %412 = vtanh.f32 %v162_v50 }
 0x257   :  { %v411_v51 = vpop.eup %410 }
 0x25b   :  { %v413_v52 = vpop.eup %412 }
 0x25c   :  { %v165_v53 = vpack.c.bf16 %v413_v52, %v411_v51 }
 0x25e   :  { %384 = vmatmul.mubr.bf16.vlgmr.msra.gmra.mrb[0].mxu1 %v165_v53 }
 0x331   :  { %v268_v56 = vpop.f32.mrb[0].mxu1 }
 0x332   :  { %v269_v57 = vadd.f32 %v268_v56, %v185_v55  ;;  %v385_v58 = vpop.f32.mrb[1].mxu1 }
 0x333   :  { %v271_v59 = vpop.f32.mrb[2].mxu1 }
 0x334   :  { %v272_v60 = vadd.f32 %v271_v59, %v185_v55  ;;  %275 = vadd.xlane.f32.xlu0 %v269_v57  ;;  %v386_v61 = vpop.f32.mrb[3].mxu1 }
 0x336   :  { %277 = vadd.xlane.f32.xlu1 %v272_v60 }
 0x3c1   :  { %v276_v62 = vpop.xlane.xlu0 %275 }
 0x3c2   :  { %v279_v63 = vmul.f32 0.0078125, %v276_v62 }
 0x3c3   :  { %v278_v0 = vpop.xlane.xlu1 %277 }
 0x3c4   :  { %v281_v1 = vsub.f32 %v269_v57, %v279_v63  ;;  %v280_v2 = vmul.f32 0.0078125, %v278_v0 }
 0x3c6   :  { %v282_v3 = vsub.f32 %v272_v60, %v280_v2  ;;  %v283_v4 = vmul.f32 %v281_v1, %v281_v1 }
 0x3c8   :  { %285 = vadd.xlane.f32.xlu0 %v283_v4  ;;  %v284_v5 = vmul.f32 %v282_v3, %v282_v3 }
 0x3ca   :  { %287 = vadd.xlane.f32.xlu1 %v284_v5 }
 0x455   :  { %v286_v6 = vpop.xlane.xlu0 %285 }
 0x456   :  { %v289_v8 = vmul.f32 0.0078125, %v286_v6 }
 0x457   :  { %v288_v10 = vpop.xlane.xlu1 %287 }
 0x458   :  { %v291_v11 = vadd.f32 1e-05, %v289_v8  ;;  %v290_v12 = vmul.f32 0.0078125, %v288_v10 }
 0x45a   :  { %414 = vrsqrt.f32 %v291_v11  ;;  %v292_v13 = vadd.f32 1e-05, %v290_v12 }
 0x45c   :  { %416 = vrsqrt.f32 %v292_v13 }
 0x464   :  { %v415_v17 = vpop.eup %414 }
 0x465   :  { %v295_v18 = vmul.f32 %v415_v17, %v281_v1 }
 0x466   :  { %v417_v20 = vpop.eup %416 }
 0x467   :  { %v301_v21 = vmul.f32 %v300_v16, %v295_v18  ;;  %v296_v22 = vmul.f32 %v417_v20, %v282_v3 }
 0x469   :  { %v302_v23 = vmul.f32 %v300_v16, %v296_v22  ;;  %v307_v24 = vadd.f32 %v306_v19, %v301_v21 }
 0x46b   :  { %418 = vtanh.f32 %v307_v24  ;;  %v308_v25 = vadd.f32 %v306_v19, %v302_v23 }
 0x46d   :  { %420 = vtanh.f32 %v308_v25 }
 0x475   :  { %v419_v28 = vpop.eup %418 }
 0x476   :  { %v315_v29 = vmul.f32 %v419_v28, %v314_v27 }
 0x477   :  { %v421_v30 = vpop.eup %420 }
 0x478   :  { %317 = vadd.xlane.f32.xlu0 %v315_v29  ;;  %v316_v31 = vmul.f32 %v421_v30, %v314_v27 }
 0x47a   :  { %319 = vadd.xlane.f32.xlu1 %v316_v31 }
 0x505   :  { %v318_v34 = vpop.xlane.xlu0 %317 }
 0x506   :  { %v325_v35 = vadd.f32 %v324_v33, %v318_v34 }
 0x507   :  { %v320_v36 = vpop.xlane.xlu1 %319 }
 0x508   :  { %328 = vst.msk [vmem:[%s601_s4] sm:$0xff] %vm327_vm2, %v325_v35  ;;  %v326_v37 = vadd.f32 %v324_v33, %v320_v36 }
 0x50a   :  { %329 = vst.msk [vmem:[%s601_s4 + $0x8] sm:$0xff] %vm327_vm2, %v326_v37 }
 0x50b   :  { %334 = vsyncpa [#allocation3], 1 }
 0x50c   :  { %335 = vsyncpa [#allocation5], 1 }

</bundles_post_ra>
